<compile_context>
chip_gen: v7x
topology: tpu7x:2x2x1
jax: 0.10.0
libtpu: 0.0.40
codegen_flags: <defaults>
</compile_context>

<pallas_src>
import jax
import jax.numpy as jnp
from jax import lax
from jax.experimental import pallas as pl
from jax.experimental.pallas import tpu as pltpu

LANES = 128          # lane width
MAX_TILE_R = 2048    # sublane rows / block: 2 inputs x 2 bufs x 1 MiB = 4 MiB VMEM (f32)
ACC_ROWS = 8         # output partial-sum rows per core (one (8,128) f32 vreg)


def _round_up(x, m):
    return ((x + m - 1) // m) * m


def _make_focal_sum_kernel(tile_r, rows_valid, steps_per_core, binary_targets):
    def kernel(p_ref, t_ref, out_ref, acc_ref):
        k = pl.program_id(1)

        @pl.when(k == 0)
        def _():
            acc_ref[...] = jnp.zeros_like(acc_ref)

        # Global row index of every element in this tile. Rows >= rows_valid are
        # Pallas edge padding (or a clamped duplicate block on the second core)
        # and must contribute exactly zero -> replace with the p=1, t=1 sentinel
        # BEFORE any log so garbage data can never produce NaN/Inf.
        block_idx = pl.program_id(0) * steps_per_core + k
        row_ids = block_idx * tile_r + lax.broadcasted_iota(
            jnp.int32, (tile_r, LANES), 0)
        valid = row_ids < rows_valid

        p = jnp.where(valid, p_ref[...].astype(jnp.float32), 1.0)
        t = jnp.where(valid, t_ref[...].astype(jnp.float32), 1.0)

        if binary_targets:
            # Targets are exactly 0/1: pt = p if t==1 else (1-p), so one log per
            # element instead of two logs + one exp (EUP is otherwise binding).
            pt = jnp.where(t >= 0.5, p, 1.0 - p)
            bce = -jnp.maximum(jnp.log(pt), -100.0)
        else:
            # torch F.binary_cross_entropy clamps each log term at -100.
            log_p = jnp.maximum(jnp.log(p), -100.0)
            log_1mp = jnp.maximum(jnp.log(1.0 - p), -100.0)
            bce = -(t * log_p + (1.0 - t) * log_1mp)
            pt = jnp.exp(-bce)

        f_loss = (1.0 - pt) * (1.0 - pt) * bce

        # Hot loop: pure element-wise VPU accumulation, no cross-lane reduction,
        # no scalar store per step.
        acc_ref[...] += f_loss

        @pl.when(k == pl.num_programs(1) - 1)
        def _():
            # One cross-sublane reduction per core: (tile_r,128) -> (8,128),
            # stored lane-dense.
            out_ref[...] = jnp.sum(
                acc_ref[...].reshape(tile_r // ACC_ROWS, ACC_ROWS, LANES), axis=0)

    return kernel


def _focal_loss_sum_pallas(p, t, binary_targets):
    """Sum of focal loss over all elements of p / t (same element count)."""
    pf = p.reshape(-1)
    tf = t.reshape(-1)                      # keep caller dtype; cast in-kernel
    n = pf.size

    # Only a (<128-element) lane tail is ever padded, with the zero-loss
    # sentinel p=1, t=1.  No full-block padding -> no extra HBM pass in the
    # common case where n % 128 == 0.
    rem = n % LANES
    if rem:
        pad = LANES - rem
        pf = jnp.pad(pf, (0, pad), constant_values=1)
        tf = jnp.pad(tf, (0, pad), constant_values=1)
    rows = pf.size // LANES

    # Sublane granularity: 8 for 32-bit dtypes, 16 for 16-bit, 32 for 8-bit/bool.
    sub = 8
    for arr in (p, t):
        sub = max(sub, 8 * (4 // max(1, jnp.dtype(arr.dtype).itemsize)))
    if rows < sub:                          # tiny inputs: pad up to one tile
        pad = (sub - rows) * LANES
        pf = jnp.pad(pf, (0, pad), constant_values=1)
        tf = jnp.pad(tf, (0, pad), constant_values=1)
        rows = sub

    pf = pf.reshape(rows, LANES)
    tf = tf.reshape(rows, LANES)

    tile_r = min(MAX_TILE_R, _round_up(rows, sub))
    num_blocks = pl.cdiv(rows, tile_r)
    # Split the reduction two ways so v7x's two TensorCores both get work; on
    # single-core chips the extra pass is at most one masked step.
    steps_per_core = pl.cdiv(num_blocks, 2)

    def in_map(c, k):
        # Clamp so the second core never DMAs past the array; its surplus
        # steps are zeroed by the in-kernel row mask.
        return (jnp.minimum(c * steps_per_core + k, num_blocks - 1), 0)

    kernel = _make_focal_sum_kernel(tile_r, rows, steps_per_core, binary_targets)

    out = pl.pallas_call(
        kernel,
        out_shape=jax.ShapeDtypeStruct((2 * ACC_ROWS, LANES), jnp.float32),
        grid_spec=pltpu.PrefetchScalarGridSpec(
            num_scalar_prefetch=0,
            grid=(2, steps_per_core),
            in_specs=[
                pl.BlockSpec((tile_r, LANES), in_map),
                pl.BlockSpec((tile_r, LANES), in_map),
            ],
            out_specs=pl.BlockSpec((ACC_ROWS, LANES), lambda c, k: (c, 0)),
            scratch_shapes=[pltpu.VMEM((tile_r, LANES), jnp.float32)],
        ),
        compiler_params=pltpu.CompilerParams(
            dimension_semantics=("parallel", "arbitrary")),
    )(pf, tf)
    # Two lane-dense partial blocks -> scalar (trivial XLA reduction).
    return jnp.sum(out)


def focal_loss(inputs, targets, alpha=1.0, binary_targets=False):
    """FocalLoss(alpha=1, gamma=2, logits=False, reduction='mean')."""
    total = _focal_loss_sum_pallas(inputs, targets, binary_targets)
    return alpha * total / inputs.size


def uunet_focal_loss(inputs, targets):
    """UUNetFocalloss.forward.

    inputs : array (N, 1, H, W) of probabilities, or a list of such arrays
    targets: array (N, H, W)
    """
    if isinstance(inputs, (list, tuple)):
        t4 = targets.astype(jnp.float32)[:, None, :, :]
        loss = jnp.float32(0.0)
        for x in inputs:
            h, w = x.shape[2], x.shape[3]
            # TODO(synk): bilinear target resize stays as jax.image.resize glue
            # (F.interpolate(mode='bilinear', align_corners=False) equivalent),
            # not fused into the Pallas kernel.
            t = jax.image.resize(
                t4, (t4.shape[0], t4.shape[1], h, w),
                method="bilinear", antialias=False)
            loss = loss + focal_loss(x, t, binary_targets=False)
        return loss

    # Non-list path: targets stay in their narrow caller dtype (int/bool) and
    # are cast in-kernel; integer/bool targets are guaranteed binary (torch BCE
    # requires targets in [0,1]), enabling the 1-transcendental fast path.
    binary = (jnp.issubdtype(targets.dtype, jnp.integer)
              or targets.dtype == jnp.bool_)
    t4 = targets[:, None, :, :]
    return focal_loss(inputs, t4, binary_targets=binary)


def _reference_uunet_focal_loss(inputs, targets):
    """Pure-JAX reference (same math as torch module) for validation."""
    def fl(p, t):
        log_p = jnp.maximum(jnp.log(p), -100.0)
        log_1mp = jnp.maximum(jnp.log(1.0 - p), -100.0)
        bce = -(t * log_p + (1.0 - t) * log_1mp)
        pt = jnp.exp(-bce)
        return jnp.mean((1.0 - pt) ** 2 * bce)

    t4 = targets.astype(jnp.float32)[:, None, :, :]
    if isinstance(inputs, (list, tuple)):
        loss = 0.0
        for x in inputs:
            h, w = x.shape[2], x.shape[3]
            t = jax.image.resize(
                t4, (t4.shape[0], t4.shape[1], h, w),
                method="bilinear", antialias=False)
            loss = loss + fl(x, t)
        return loss
    return fl(inputs, t4)


if __name__ == "__main__":
    key = jax.random.PRNGKey(0)
    k1, k2, k3 = jax.random.split(key, 3)

    # Single-scale: (N=2, C=1, H=32, W=32) probability map, binary int targets.
    inputs = jax.random.uniform(
        k1, (2, 1, 32, 32), dtype=jnp.float32, minval=0.01, maxval=0.99)
    targets = (jax.random.uniform(k2, (2, 32, 32)) > 0.5).astype(jnp.int32)

    loss = jax.block_until_ready(uunet_focal_loss(inputs, targets))
    ref = _reference_uunet_focal_loss(inputs, targets)
    assert jnp.allclose(loss, ref, rtol=1e-5, atol=1e-6), (loss, ref)

    # Multi-scale list path (resized, fractional targets -> general formula).
    inputs_list = [
        inputs,
        jax.random.uniform(
            k3, (2, 1, 16, 16), dtype=jnp.float32, minval=0.01, maxval=0.99),
    ]
    loss_l = jax.block_until_ready(uunet_focal_loss(inputs_list, targets))
    ref_l = _reference_uunet_focal_loss(inputs_list, targets)
    assert jnp.allclose(loss_l, ref_l, rtol=1e-5, atol=1e-6), (loss_l, ref_l)

    print("KERNEL_OK")
</pallas_src>

<mosaic_0001>
module attributes {stable_mosaic.version = 11 : i64} {
  func.func @kernel(%arg0: i32, %arg1: i32, %arg2: memref<16x128xf32, #tpu.memory_space<vmem>>, %arg3: memref<16x128xi32, #tpu.memory_space<vmem>>, %arg4: memref<8x128xf32, #tpu.memory_space<vmem>>, %arg5: memref<16x128xf32, #tpu.memory_space<vmem>>) attributes {dimension_semantics = [#tpu.dimension_semantics<parallel>, #tpu.dimension_semantics<arbitrary>], iteration_bounds = array<i64: 2, 1>, scalar_prefetch = 0 : i64, scratch_operands = 1 : i64, tpu.core_type = #tpu.core_type<tc>, window_params = [{transform_indices = @transform_0, window_bounds = array<i64: 16, 128>}, {transform_indices = @transform_1, window_bounds = array<i64: 16, 128>}, {transform_indices = @transform_2, window_bounds = array<i64: 8, 128>}]} {
    %c0_i32 = arith.constant 0 : i32
    %0 = arith.cmpi eq, %arg1, %c0_i32 : i32
    %1 = arith.extui %0 : i1 to i32
    %c0_i32_0 = arith.constant 0 : i32
    %2 = arith.cmpi ne, %1, %c0_i32_0 : i32
    scf.if %2 {
      %cst_18 = arith.constant 0.000000e+00 : f32
      %40 = vector.broadcast %cst_18 : f32 to vector<16x128xf32>
      %c0_19 = arith.constant 0 : index
      %c0_20 = arith.constant 0 : index
      %41 = vector.load %arg5[%c0_19, %c0_20] : memref<16x128xf32, #tpu.memory_space<vmem>>, vector<16x128xf32>
      tpu.vector_store %arg5[%c0_19, %c0_20], %40 {strides = array<i32>} : memref<16x128xf32, #tpu.memory_space<vmem>>, vector<16x128xf32>,
    } else {
    }
    %c1_i32 = arith.constant 1 : i32
    %3 = arith.muli %arg0, %c1_i32 : i32
    %4 = arith.addi %3, %arg1 : i32
    %c16_i32 = arith.constant 16 : i32
    %5 = arith.muli %4, %c16_i32 : i32
    %6 = tpu.iota {dimensions = array<i32: 0>} : vector<16x128xi32>
    %7 = vector.broadcast %5 : i32 to vector<16x128xi32>
    %8 = arith.addi %7, %6 : vector<16x128xi32>
    %c16_i32_1 = arith.constant 16 : i32
    %9 = vector.broadcast %c16_i32_1 : i32 to vector<16x128xi32>
    %10 = arith.cmpi slt, %8, %9 : vector<16x128xi32>
    %c0 = arith.constant 0 : index
    %c0_2 = arith.constant 0 : index
    %11 = vector.load %arg2[%c0, %c0_2] : memref<16x128xf32, #tpu.memory_space<vmem>>, vector<16x128xf32>
    %cst = arith.constant 1.000000e+00 : f32
    %12 = vector.broadcast %cst : f32 to vector<16x128xf32>
    %13 = arith.select %10, %11, %12 : vector<16x128xi1>, vector<16x128xf32>
    %c0_3 = arith.constant 0 : index
    %c0_4 = arith.constant 0 : index
    %14 = vector.load %arg3[%c0_3, %c0_4] : memref<16x128xi32, #tpu.memory_space<vmem>>, vector<16x128xi32>
    %15 = arith.sitofp %14 : vector<16x128xi32> to vector<16x128xf32>
    %cst_5 = arith.constant 1.000000e+00 : f32
    %16 = vector.broadcast %cst_5 : f32 to vector<16x128xf32>
    %17 = arith.select %10, %15, %16 : vector<16x128xi1>, vector<16x128xf32>
    %cst_6 = arith.constant 5.000000e-01 : f32
    %18 = vector.broadcast %cst_6 : f32 to vector<16x128xf32>
    %19 = arith.cmpf oge, %17, %18 : vector<16x128xf32>
    %cst_7 = arith.constant 1.000000e+00 : f32
    %20 = vector.broadcast %cst_7 : f32 to vector<16x128xf32>
    %21 = arith.subf %20, %13 : vector<16x128xf32>
    %22 = arith.select %19, %13, %21 : vector<16x128xi1>, vector<16x128xf32>
    %23 = math.log %22 : vector<16x128xf32>
    %cst_8 = arith.constant -1.000000e+02 : f32
    %24 = vector.broadcast %cst_8 : f32 to vector<16x128xf32>
    %25 = arith.maximumf %23, %24 : vector<16x128xf32>
    %cst_9 = arith.constant 0.000000e+00 : f32
    %26 = vector.broadcast %cst_9 : f32 to vector<16x128xf32>
    %27 = arith.subf %26, %25 : vector<16x128xf32>
    %cst_10 = arith.constant 1.000000e+00 : f32
    %28 = vector.broadcast %cst_10 : f32 to vector<16x128xf32>
    %29 = arith.subf %28, %22 : vector<16x128xf32>
    %cst_11 = arith.constant 1.000000e+00 : f32
    %30 = vector.broadcast %cst_11 : f32 to vector<16x128xf32>
    %31 = arith.subf %30, %22 : vector<16x128xf32>
    %32 = arith.mulf %29, %31 : vector<16x128xf32>
    %33 = arith.mulf %32, %27 : vector<16x128xf32>
    %c0_12 = arith.constant 0 : index
    %c0_13 = arith.constant 0 : index
    %34 = vector.load %arg5[%c0_12, %c0_13] : memref<16x128xf32, #tpu.memory_space<vmem>>, vector<16x128xf32>
    %35 = arith.addf %34, %33 : vector<16x128xf32>
    %c0_14 = arith.constant 0 : index
    %c0_15 = arith.constant 0 : index
    %36 = vector.load %arg5[%c0_14, %c0_15] : memref<16x128xf32, #tpu.memory_space<vmem>>, vector<16x128xf32>
    tpu.vector_store %arg5[%c0_14, %c0_15], %35 {strides = array<i32>} : memref<16x128xf32, #tpu.memory_space<vmem>>, vector<16x128xf32>,
    %c0_i32_16 = arith.constant 0 : i32
    %37 = arith.cmpi eq, %arg1, %c0_i32_16 : i32
    %38 = arith.extui %37 : i1 to i32
    %c0_i32_17 = arith.constant 0 : i32
    %39 = arith.cmpi ne, %38, %c0_i32_17 : i32
    scf.if %39 {
      %c0_18 = arith.constant 0 : index
      %c0_19 = arith.constant 0 : index
      %40 = vector.load %arg5[%c0_18, %c0_19] : memref<16x128xf32, #tpu.memory_space<vmem>>, vector<16x128xf32>
      %41 = vector.shape_cast %40 : vector<16x128xf32> to vector<2x8x128xf32>
      %cst_20 = arith.constant dense<0.000000e+00> : vector<8x128xf32>
      %42 = vector.multi_reduction <add>, %41, %cst_20 [0] : vector<2x8x128xf32> to vector<8x128xf32>
      %c0_21 = arith.constant 0 : index
      %c0_22 = arith.constant 0 : index
      %43 = vector.load %arg4[%c0_21, %c0_22] : memref<8x128xf32, #tpu.memory_space<vmem>>, vector<8x128xf32>
      tpu.vector_store %arg4[%c0_21, %c0_22], %42 {strides = array<i32>} : memref<8x128xf32, #tpu.memory_space<vmem>>, vector<8x128xf32>,
    } else {
    }
    return
  }
  func.func @transform_0(%arg0: i32, %arg1: i32) -> (i32, i32) {
    %c1_i32 = arith.constant 1 : i32
    %0 = arith.muli %arg0, %c1_i32 : i32
    %1 = arith.addi %0, %arg1 : i32
    %c0_i32 = arith.constant 0 : i32
    %2 = arith.minsi %1, %c0_i32 : i32
    %c0_i32_0 = arith.constant 0 : i32
    %c0_i32_1 = arith.constant 0 : i32
    return %2, %c0_i32_0 : i32, i32
  }
  func.func @transform_1(%arg0: i32, %arg1: i32) -> (i32, i32) {
    %c1_i32 = arith.constant 1 : i32
    %0 = arith.muli %arg0, %c1_i32 : i32
    %1 = arith.addi %0, %arg1 : i32
    %c0_i32 = arith.constant 0 : i32
    %2 = arith.minsi %1, %c0_i32 : i32
    %c0_i32_0 = arith.constant 0 : i32
    %c0_i32_1 = arith.constant 0 : i32
    return %2, %c0_i32_0 : i32, i32
  }
  func.func @transform_2(%arg0: i32, %arg1: i32) -> (i32, i32) {
    %c0_i32 = arith.constant 0 : i32
    %c0_i32_0 = arith.constant 0 : i32
    return %arg0, %c0_i32 : i32, i32
  }
}

</mosaic_0001>

<bundles_post_ra>
// kernel: tpu_custom_call.1
= control target key start
LH: loop header
LB: loop body
LE: loop exit
PB: predicated region body
PF: predicated region fallthrough
CT: control target
= control target key end

     0   :  { %7 = vsyncpa [#allocation4], 0  ;;  %s925_s0 = inlined_call_operand.hbm [shape: f32[16,128], index: 0, kind: input, shape index: {}]   ;;  %s926_s1 = inlined_call_operand.hbm [shape: s32[16,128], index: 1, kind: input, shape index: {}]   ;;  %s927_s2 = inlined_call_operand.hbm [shape: f32[16,128], index: 2, kind: output, shape index: {}]  }
   0x1   :  { %9 = vsyncpa [#allocation4 + $0x1], 0 }
   0x2   :  { %10 = vsyncpa [#allocation7], 0 }
   0x3   :  { %12 = vsyncpa [#allocation7 + $0x1], 0 }
   0x4   :  { %13 = vsyncpa [#allocation5], 0 }
   0x5   :  { %15 = vsyncpa [#allocation5 + $0x1], 0  ;;  %s721_s9 = smov 0   ;;  %s723_s10 = smov 0  }
   0x6   :  { %s725_s11 = smov 0   ;;  %s727_s12 = smov 0  }
   0x7   :  { %s729_s13 = smov 0   ;;  %s731_s14 = smov 0  }
   0x8   :  { %s733_s15 = smov 0   ;;  %s735_s16 = smov 0  }
   0x9 LB: > { %s414_s17 = sadd.s32 4294967295, %s699_s16   ;;  %s415_s18 = sadd.s32 4294967294, %s699_s16   ;;  %s699_s16 = sphi %s735_s16, %s21_s16   ;;  %s695_s15 = sphi %s733_s15, %s946_s15   ;;  %s691_s14 = sphi %s731_s14, %s945_s14   ;;  %s687_s13 = sphi %s729_s13, %s915_s13   ;;  %s683_s12 = sphi %s727_s12, %s944_s12   ;;  %s679_s11 = sphi %s725_s11, %s943_s11   ;;  %s675_s10 = sphi %s723_s10, %s942_s10   ;;  %s671_s9 = sphi %s721_s9, %s941_s9  }
   0xa   : > { %s33_s19 = sadd.s32 1, %s695_s15  ;;  %p668_p1 = scmp.ne.s32.totalorder %s687_s13, 0 }
   0xb   : > { %p35_p0 = scmp.ge.s32.totalorder %s33_s19, 2  ;;  %p54_p2 = scmp.eq.s32.totalorder %s699_s16, 0 }
   0xc   : > { %p59_p3 = scmp.ne.s32.totalorder %s687_s13, %s683_s12  ;;  %p60_p5 = scmp.eq.s32.totalorder %s414_s17, 0 }
   0xd   : > { %s948_s19 = smov (%p35_p0, %s33_s19), 0  ;;  %p767_p4 = por %p668_p1, %p54_p2 }
   0xe   : > { %p771_p6 = por %p60_p5, %p59_p3  ;;  %s101_s22 = ssub.s32 %s695_s15, %s948_s19 }
   0xf   : > { %p102_p7 = scmp.eq.s32.totalorder %s101_s22, 0  ;;  %s104_s23 = sadd.s32 1, %s679_s11 }
  0x10   : > { %s931_s21 = scalar_select %p771_p6, 1, 0 }
  0x11   : > { %s779_s24 = scalar_select %p102_p7, %s679_s11, %s104_s23  }
  0x12   : > { %p114_p8 = scmp.ne.s32.totalorder %s679_s11, %s675_s10  ;;  %p115_p9 = scmp.eq.s32.totalorder %s414_s17, 1 }
  0x13   : > { %p120_p10 = scmp.ne.s32.totalorder %s675_s10, %s671_s9  ;;  %p121_p11 = scmp.eq.s32.totalorder %s415_s18, 1 }
  0x14   : > { %p785_p12 = por %p115_p9, %p114_p8  ;;  %p452_p1 = scmp.lt.s32.totalorder %s699_s16, 2 }
  0x15   : > { %p790_p0 = por %p121_p11, %p120_p10  ;;  %s701_s27 = smov [#allocation3]  }
  0x16   : > { %s932_s25 = scalar_select %p785_p12, 1, 0 }
  0x17   : > { %s933_s26 = scalar_select %p790_p0, 1, 0 }
  0x18   : > { %s155_s28 = sshll.u32 %s701_s27, 4  ;;  %p797_p2 = pnand %p452_p1, %p767_p4  ;;  %s156_s28 = int_to_ptr.vmem [resolvable:$true] %s155_s28 }
  0x19   : > { %s532_s4 = scalar_lea.hbm %s925_s0, 256 }
  0x1a   : > { %p533_p3 = scmp.ne.s32.totalorder %s925_s0, %s532_s4  ;;  %p534_p5 = pneg %p797_p2 }
  0x1b   : > { %p539_p8 = scmp.lt.u32.totalorder %s532_s4, %s532_s4  ;;  %p541_p9 = scmp.lt.u32.totalorder %s532_s4, %s925_s0 }
  0x1c   : > { %p535_p7 = pnand %p534_p5, %p533_p3 }
  0x1d   : > { %p542_p10 = por %p541_p9, %p539_p8 }
  0x1e   : > { %p536_p4 = pneg %p535_p7 }
  0x20   : > { %p543_p11 = pnand %p542_p10, %p536_p4 }
  0x22   : > { %546 = shalt.err (!%p543_p11)
}
  0x23   : > { %s547_s12 = scalar_lea.vmem %s156_s28, 256  ;;  %s554_s17 = scalar_lea.vmem %s156_s28, 512 }
  0x24   : > { %p548_p1 = scmp.ne.s32.totalorder %s156_s28, %s547_s12  ;;  %p555_p12 = scmp.lt.s32.totalorder %s156_s28, %s156_s28 }
  0x25   : > { %p556_p6 = scmp.lt.s32.totalorder %s554_s17, %s547_s12 }
  0x26   : > { %p550_p13 = pnand %p548_p1, %p534_p5 }
  0x27   : > { %p557_p3 = por %p556_p6, %p555_p12 }
  0x28   : > { %p551_p0 = pneg %p550_p13 }
  0x2a   : > { %p558_p7 = pnand %p557_p3, %p551_p0 }
  0x2c   : > { %561 = shalt.err (!%p558_p7)
}
  0x2d   : > { %s702_s18 = smov 128   ;;  %s703_s20 = smov 8  }
  0x2e   : > { %444 = dma.hbm_to_vmem [thread:$0]  (!%p797_p2), %s925_s0, 256, %s156_s28, [#allocation4], %s702_s18, %s702_s18, %s703_s20  }
  0x2f   : > { %p424_p13 = scmp.ge.s32.totalorder %s699_s16, 1  ;;  %p187_p4 = scmp.lt.s32.totalorder %s699_s16, 3 }
  0x30   : > { %s704_s30 = smov [#allocation6]   ;;  %s562_s6 = scalar_lea.hbm %s926_s1, 256 }
  0x31   : > { %p828_p8 = pnand %p424_p13, %p187_p4  ;;  %s179_s3 = sshll.u32 %s704_s30, 4  ;;  %s180_s3 = int_to_ptr.vmem [resolvable:$true] %s179_s3 }
  0x32   : > { %p563_p6 = scmp.ne.s32.totalorder %s926_s1, %s562_s6  ;;  %p569_p9 = scmp.lt.u32.totalorder %s562_s6, %s562_s6 }
  0x33   : > { %s935_s27 = scalar_select %p828_p8, 1, 0 }
  0x34   : > { %p565_p12 = pnand %p563_p6, %p534_p5  ;;  %p571_p10 = scmp.lt.u32.totalorder %s562_s6, %s926_s1 }
  0x36   : > { %p566_p0 = pneg %p565_p12  ;;  %p572_p11 = por %p571_p10, %p569_p9 }
  0x38   : > { %p573_p1 = pnand %p572_p11, %p566_p0 }
  0x3a   : > { %576 = shalt.err (!%p573_p1)
}
  0x3b   : > { %s577_s17 = scalar_lea.vmem %s180_s3, 256  ;;  %s584_s22 = scalar_lea.vmem %s180_s3, 512 }
  0x3c   : > { %p578_p3 = scmp.ne.s32.totalorder %s180_s3, %s577_s17  ;;  %p585_p4 = scmp.lt.s32.totalorder %s180_s3, %s180_s3 }
  0x3d   : > { %p586_p8 = scmp.lt.s32.totalorder %s584_s22, %s577_s17 }
  0x3e   : > { %p580_p7 = pnand %p578_p3, %p534_p5 }
  0x3f   : > { %p587_p6 = por %p586_p8, %p585_p4 }
  0x40   : > { %p581_p13 = pneg %p580_p7 }
  0x42   : > { %p588_p12 = pnand %p587_p6, %p581_p13 }
  0x44   : > { %591 = shalt.err (!%p588_p12)
}
  0x45   : > { %447 = dma.hbm_to_vmem [thread:$0]  (!%p797_p2), %s926_s1, 256, %s180_s3, [#allocation7], %s702_s18, %s702_s18, %s703_s20  }
  0x46   : > { %p936_p0 = scmp.ne.s32.totalorder %s935_s27, 0 }
  0x47   : > { %s193_s4 = sand.u32 (!%p936_p0), 1, %s687_s13   ;;  %p937_p5 = scmp.ne.s32.totalorder (!%p936_p0), %s931_s21, 0 }
  0x48   : > { %191 = sbr.rel (%p936_p0) target bundleno = 130 (0x82), region = 28  ;;  %s425_s5 = sshll.u32 (!%p936_p0), %s193_s4, 4 }
  0x49   : > { %s194_s6 = scalar_lea.sflag (!%p936_p0), [#allocation4], %s193_s4  ;;  %s197_s7 = scalar_lea.vmem (!%p936_p0), [#allocation3], %s425_s5 }
  0x4f   : > { %657 = dma.done.wait (%p937_p5), %s194_s6, 256  }
  0x50   : > { %659 = vsyncadd (%p937_p5), %s194_s6, 4294967040  ;;  %s203_s29 = scalar_lea.sflag [#allocation7], %s193_s4  ;;  %s206_s8 = scalar_lea.vmem [#allocation6], %s425_s5 }
  0x51   : > { %661 = dma.done.wait (%p937_p5), %s203_s29, 256  }
  0x52   : > { %663 = vsyncadd (%p937_p5), %s203_s29, 4294967040  ;;  %s428_s18 = sshll.u32 %s691_s14, 4  ;;  %v248_v0 = vlaneseq  ;;  %v256_v6 = vld [vmem:[%s197_s7] sm:$0xff]  ;;  %v257_v7 = vld [vmem:[%s197_s7 + $0x8] sm:$0xff]  ;;  %s229_s21 = sand.u32 1, %s675_s10  }
  0x53   : > { %v251_v1 = vstv %s428_s18  ;;  %v260_v8 = vld [vmem:[%s206_s8] sm:$0xff]  ;;  %v261_v10 = vld [vmem:[%s206_s8 + $0x8] sm:$0xff]  ;;  %s427_s20 = sshll.u32 %s229_s21, 3  ;;  %s430_s28 = sshll.u32 %s691_s14, 7 }
  0x54   : > { %v249_v2 = vshrl.u32 %v248_v0, 7  ;;  %v262_v11 = vcvt.s32.f32 %v260_v8  ;;  %v263_v13 = vcvt.s32.f32 %v261_v10  ;;  %s231_s27 = scalar_lea.vmem [#allocation8], %s427_s20  ;;  %s874_s22 = scalar_lea.hbm %s927_s2, %s430_s28 }
  0x55   : > { %s313_s3 = sshll.u32 %s231_s27, 4  ;;  %s300_s23 = scalar_lea.sflag [#allocation5], %s229_s21  ;;  %s869_s3 = int_to_ptr.vmem [resolvable:$true] %s313_s3 }
  0x56   : > { %v250_v3 = vadd.s32 8, %v249_v2  ;;  %v252_v4 = vadd.s32 %v251_v1, %v249_v2  ;;  %s592_s30 = scalar_lea.vmem %s869_s3, 128  ;;  %p938_p8 = scmp.ne.s32.totalorder %s932_s25, 0 }
  0x57   : > { %p593_p2 = scmp.ne.s32.totalorder %s869_s3, %s592_s30  ;;  %s705_s14 = smov [#allocation8]  }
  0x58   : > { %v253_v5 = vadd.s32 %v251_v1, %v250_v3  ;;  %vm254_vm0 = vcmp.lt.s32.totalorder %v252_v4, 16  ;;  %s596_s4 = sshll.u32 %s705_s14, 4  ;;  %s597_s4 = int_to_ptr.vmem [resolvable:$false] %s596_s4 }
  0x59   : > { %v258_v9 = vsel %vm254_vm0, %v256_v6, 1.0  ;;  %v264_v15 = vsel %vm254_vm0, %v262_v11, 1.0  ;;  %p594_p9 = pnand %p593_p2, %p938_p8  ;;  %s598_s5 = scalar_lea.vmem %s597_s4, 256 }
  0x5a   : > { %vm255_vm1 = vcmp.lt.s32.totalorder %v253_v5, 16  ;;  %v268_v14 = vsub.f32 1.0, %v258_v9  ;;  %vm266_vm2 = vcmp.ge.f32.partialorder %v264_v15, 0.5  ;;  %p599_p11 = scmp.lt.s32.totalorder %s869_s3, %s597_s4  ;;  %p600_p1 = scmp.lt.s32.totalorder %s598_s5, %s592_s30 }
  0x5b   : > { %v259_v12 = vsel %vm255_vm1, %v257_v7, 1.0  ;;  %v265_v17 = vsel %vm255_vm1, %v263_v13, 1.0  ;;  %p595_p10 = pneg %p594_p9 }
  0x5c   : > { %v269_v16 = vsub.f32 1.0, %v259_v12  ;;  %vm267_vm3 = vcmp.ge.f32.partialorder %v265_v17, 0.5  ;;  %v270_v18 = vsel %vm266_vm2, %v258_v9, %v268_v14  ;;  %p601_p3 = por %p600_p1, %p599_p11 }
  0x5d   : > { %528 = vlog2.f32 %v270_v18  ;;  %v280_v20 = vsub.f32 1.0, %v270_v18 }
  0x5e   : > { %v271_v19 = vsel %vm267_vm3, %v259_v12, %v269_v16  ;;  %p602_p7 = pnand %p601_p3, %p595_p10 }
  0x5f   : > { %530 = vlog2.f32 %v271_v19  ;;  %v281_v22 = vsub.f32 1.0, %v271_v19  ;;  %v282_v27 = vmul.f32 %v280_v20, %v280_v20 }
  0x61   : > { %v283_v29 = vmul.f32 %v281_v22, %v281_v22 }
  0x67   : > { %v529_v21 = vpop.eup %528 }
  0x68   : > { %v273_v24 = vmul.f32 0.6931472, %v529_v21 }
  0x69   : > { %v531_v23 = vpop.eup %530 }
  0x6a   : > { %v275_v25 = vmul.f32 0.6931472, %v531_v23  ;;  %v276_v26 = vmax.f32 %v273_v24, -100.0 }
  0x6c   : > { %v277_v28 = vmax.f32 %v275_v25, -100.0  ;;  %v278_v30 = vsub.f32 0.0, %v276_v26 }
  0x6e   : > { %v279_v31 = vsub.f32 0.0, %v277_v28  ;;  %v284_v32 = vmul.f32 %v282_v27, %v278_v30 }
  0x70   : > { %v285_v33 = vmul.f32 %v283_v29, %v279_v31 }
  0x72   : > { %v297_v34 = vadd.f32 %v285_v33, %v284_v32 }
  0x74   : > { %298 = vst [vmem:[%s231_s27] sm:$0xff] %v297_v34 }
  0x75   : > { %605 = shalt.err (!%p602_p7)
}
  0x76   : > { %s606_s6 = scalar_lea.hbm %s874_s22, 128  ;;  %s610_s8 = scalar_lea.hbm %s927_s2, 256 }
  0x77   : > { %p607_p13 = scmp.ne.s32.totalorder %s874_s22, %s606_s6  ;;  %p611_p12 = scmp.lt.u32.totalorder %s874_s22, %s927_s2 }
  0x78   : > { %p612_p0 = scmp.lt.u32.totalorder %s610_s8, %s606_s6  ;;  %p614_p2 = scmp.lt.u32.totalorder %s606_s6, %s874_s22 }
  0x79   : > { %p608_p4 = pnand %p607_p13, %p938_p8 }
  0x7a   : > { %p613_p5 = por %p612_p0, %p611_p12 }
  0x7b   : > { %p609_p6 = pneg %p608_p4 }
  0x7c   : > { %p615_p9 = por %p614_p2, %p613_p5 }
  0x7e   : > { %p616_p10 = pnand %p615_p9, %p609_p6 }
  0x80   : > { %619 = shalt.err (!%p616_p10)
}
  0x81   : > { %439 = dma.vmem_to_hbm [thread:$0]  (%p938_p8), %s869_s3, 128, %s874_s22, %s300_s23  }
  0x82 PF: > { %s325_s20 = sand.u32 1, %s671_s9   ;;  %p939_p11 = scmp.ne.s32.totalorder %s933_s26, 0 }
  0x83   : > { %p940_p1 = scmp.ge.s32.totalorder %s699_s16, 2  ;;  %s326_s27 = scalar_lea.sflag [#allocation5], %s325_s20 }
  0x85   : > { %p449_p3 = pnand %p940_p1, %p939_p11 }
  0x87   : > { %665 = dma.done.wait (!%p449_p3), %s326_s27, 128  }
  0x88   : > { %667 = vsyncadd (!%p449_p3), %s326_s27, 4294967168  ;;  %s21_s16 = sadd.s32 1, %s699_s16   ;;  %s941_s9 = smov %s675_s10 }
  0x89   : > { %p18_p7 = scmp.ge.s32.totalorder %s21_s16, 4   ;;  %s942_s10 = smov %s679_s11 }
  0x8a   : > { %s943_s11 = smov %s779_s24  ;;  %s944_s12 = smov %s687_s13 }
  0x8b   : > { %s915_s13 = smov 0   ;;  %s945_s14 = smov %s695_s15 }
  0x8c   : > { %s946_s15 = smov %s948_s19  ;;  %20 = sbr.rel (!%p18_p7) target bundleno = 9 (0x9), region = 94 }
  0x93   :  { %331 = vsyncpa [#allocation4], 1 }
  0x94   :  { %333 = vsyncpa [#allocation4 + $0x1], 1 }
  0x95   :  { %334 = vsyncpa [#allocation7], 1 }
  0x96   :  { %336 = vsyncpa [#allocation7 + $0x1], 1 }
  0x97   :  { %337 = vsyncpa [#allocation5], 1 }
  0x98   :  { %339 = vsyncpa [#allocation5 + $0x1], 1 }

</bundles_post_ra>
